<compile_context>
chip_gen: v7x
topology: tpu7x:2x2x1
jax: 0.10.0
libtpu: 0.0.40
codegen_flags: <defaults>
</compile_context>

<pallas_src>
import numpy as np
import jax
import jax.numpy as jnp
from jax.experimental import pallas as pl
from jax.experimental.pallas import tpu as pltpu


# ---------------------------------------------------------------------------
# Pallas kernels
# ---------------------------------------------------------------------------
def _linear_kernel(x_ref, w_ref, b_ref, o_ref):
    """One M-tile of the hoisted input projection: o = x @ w + b (bf16 out, f32 acc)."""
    o_ref[...] = (
        jnp.dot(x_ref[...], w_ref[...], preferred_element_type=jnp.float32)
        + b_ref[...]
    ).astype(o_ref.dtype)


def linear_pallas(x_bf16, w_bf16, b_f32, tm=512):
    """x: (M, K) bf16, w: (K, N) bf16, b: (1, N) f32 -> (M, N) bf16.

    Gridded over M row tiles ("parallel") so the GEMM pipelines / splits across TCs
    at realistic sizes; tiny M collapses to a single full-extent block.
    """
    M, K = x_bf16.shape
    N = w_bf16.shape[1]
    bm = M if M <= tm else tm
    Mp = pl.cdiv(M, bm) * bm
    xp = x_bf16 if Mp == M else jnp.pad(x_bf16, ((0, Mp - M), (0, 0)))
    out = pl.pallas_call(
        _linear_kernel,
        out_shape=jax.ShapeDtypeStruct((Mp, N), jnp.bfloat16),
        grid_spec=pltpu.PrefetchScalarGridSpec(
            num_scalar_prefetch=0,
            grid=(Mp // bm,),
            in_specs=[pl.BlockSpec((bm, K), lambda i: (i, 0)),
                      pl.BlockSpec((K, N), lambda i: (0, 0)),
                      pl.BlockSpec((1, N), lambda i: (0, 0))],
            out_specs=pl.BlockSpec((bm, N), lambda i: (i, 0)),
        ),
        compiler_params=pltpu.CompilerParams(dimension_semantics=("parallel",)),
    )(xp, w_bf16, b_f32)
    return out if Mp == M else out[:M]


def _segmean_kernel(oh_ref, rows_ref, e_ref, o_ref):
    """facts[b] = onehot_T[b] @ (rows[b] @ E[b]) for one batch item (grid axis 0 = b).

    rows[b]     : (S, L)    per-sentence averaging rows (1/len over each span)
    onehot_T[b] : (maxF, S) compaction of non-empty sentences onto fact slots
    E[b]        : (L, Emb)  embedded document
    """
    seg = jnp.dot(rows_ref[...], e_ref[...], preferred_element_type=jnp.float32)
    o_ref[...] = jnp.dot(oh_ref[...], seg,
                         preferred_element_type=jnp.float32).astype(o_ref.dtype)


def segment_mean_pallas(onehot_T, rows, emb_docs):
    B, maxF, S = onehot_T.shape
    L = rows.shape[-1]
    Emb = emb_docs.shape[-1]
    return pl.pallas_call(
        _segmean_kernel,
        out_shape=jax.ShapeDtypeStruct((B, maxF, Emb), jnp.bfloat16),
        grid_spec=pltpu.PrefetchScalarGridSpec(
            num_scalar_prefetch=0,
            grid=(B,),
            in_specs=[pl.BlockSpec((None, maxF, S), lambda b: (b, 0, 0)),
                      pl.BlockSpec((None, S, L), lambda b: (b, 0, 0)),
                      pl.BlockSpec((None, L, Emb), lambda b: (b, 0, 0))],
            out_specs=pl.BlockSpec((None, maxF, Emb), lambda b: (b, 0, 0)),
        ),
        compiler_params=pltpu.CompilerParams(dimension_semantics=("parallel",)),
    )(onehot_T, rows, emb_docs)


def _fused_gru_kernel(gi_fb_ref, gi_q_ref, whh_ref, bhh_ref, nf_ref, ql_ref,
                      out_ref, hq_ref):
    """Fused recurrence for {input-GRU fwd, input-GRU bwd, question-GRU}.

    Carried state h = [h_fwd | h_bwd | h_q]  (B, 3*Hp); each step is ONE MXU dot
    against the block-diagonal recurrent weight, so the serial chain is max(F, Lq).

    gi_fb_ref: (F,  B, 6*Hp) bf16  hoisted x@W_ih^T+b_ih for fwd|bwd directions
    gi_q_ref : (Lq, B, 3*Hp) bf16  hoisted projection for the question GRU
    whh_ref  : (3*Hp, 9*Hp)  bf16  block-diag recurrent weights (pre-transposed)
    bhh_ref  : (1, 9*Hp)     f32   concatenated recurrent biases
    nf_ref   : (B, 1) i32          number of facts per batch item
    ql_ref   : (B, 1) i32          query lengths
    out_ref  : (F, B, Hp) f32      fwd + bwd outputs summed (zeros past each length)
    hq_ref   : (B, Hp) f32         final question hidden (frozen at each length)
    """
    F, B, _ = gi_fb_ref.shape
    Lq = gi_q_ref.shape[0]
    Hp = hq_ref.shape[-1]
    T = max(F, Lq)

    nf = nf_ref[...]
    ql = ql_ref[...]
    bhh = bhh_ref[...]                       # hoisted out of the loop
    out_ref[...] = jnp.zeros_like(out_ref)   # fwd/bwd accumulate into it

    def gru_gates(gi, gh, h):
        # PyTorch GRU gate order [r, z, n]; n uses r * (W_hn h + b_hn).
        r = jax.nn.sigmoid(gi[:, :Hp] + gh[:, :Hp])
        z = jax.nn.sigmoid(gi[:, Hp:2 * Hp] + gh[:, Hp:2 * Hp])
        n = jnp.tanh(gi[:, 2 * Hp:] + r * gh[:, 2 * Hp:])
        return (1.0 - z) * n + z * h

    def step(s, h):
        s_f = jnp.minimum(s, F - 1)          # clamp (masked anyway when s >= F)
        s_q = jnp.minimum(s, Lq - 1)
        t_rev_u = F - 1 - s                  # backward direction walks time in reverse
        t_rev = jnp.maximum(t_rev_u, 0)

        gi_f = gi_fb_ref[s_f][:, :3 * Hp].astype(jnp.float32)
        gi_b = gi_fb_ref[t_rev][:, 3 * Hp:].astype(jnp.float32)
        gi_q = gi_q_ref[s_q].astype(jnp.float32)

        # TODO(synk): keep whh resident in the MXU across steps
        # (pltpu.matmul_push_rhs / matmul_acc_lhs / matmul_pop) once verified in bundles.
        gh = jnp.dot(h.astype(jnp.bfloat16), whh_ref[...],
                     preferred_element_type=jnp.float32) + bhh      # (B, 9*Hp)

        h_f = h[:, :Hp]
        h_b = h[:, Hp:2 * Hp]
        h_q = h[:, 2 * Hp:]
        hf_new = gru_gates(gi_f, gh[:, :3 * Hp], h_f)
        hb_new = gru_gates(gi_b, gh[:, 3 * Hp:6 * Hp], h_b)
        hq_new = gru_gates(gi_q, gh[:, 6 * Hp:], h_q)

        mask_f = nf > s                                   # (B, 1)
        mask_b = (nf > t_rev_u) & (t_rev_u >= 0)
        mask_q = ql > s

        zero = jnp.zeros_like(hf_new)
        # fwd writes time index s, bwd writes time index F-1-s; both accumulate into the
        # SAME buffer so out = fwd + bwd (padded positions receive exact zeros).
        out_ref[s_f] = out_ref[s_f] + jnp.where(mask_f, hf_new, zero)
        out_ref[t_rev] = out_ref[t_rev] + jnp.where(mask_b, hb_new, zero)

        return jnp.concatenate(
            [jnp.where(mask_f, hf_new, h_f),
             jnp.where(mask_b, hb_new, h_b),
             jnp.where(mask_q, hq_new, h_q)], axis=-1)

    h0 = jnp.zeros((B, 3 * Hp), jnp.float32)
    # data-dependent chain: full unroll buys no overlap; partial unroll keeps LLO
    # visibility at bounded instruction/vreg pressure.
    h_fin = jax.lax.fori_loop(0, T, step, h0, unroll=4)
    hq_ref[...] = h_fin[:, 2 * Hp:]


def fused_gru_pallas(gi_fb, gi_q, whh_blk, bhh_cat, nf, ql):
    F, B, _ = gi_fb.shape
    Hp = whh_blk.shape[0] // 3
    # TODO(synk): for realistic DMN sizes, chunk the time axis (emit_pipeline or a
    # T-chunk "arbitrary" grid axis carrying h in scratch) and set vmem_limit_bytes
    # for v7x's 64 MiB VMEM.
    return pl.pallas_call(
        _fused_gru_kernel,
        out_shape=(jax.ShapeDtypeStruct((F, B, Hp), jnp.float32),
                   jax.ShapeDtypeStruct((B, Hp), jnp.float32)),
    )(gi_fb, gi_q, whh_blk, bhh_cat, nf, ql)


# ---------------------------------------------------------------------------
# InputModule in JAX
# ---------------------------------------------------------------------------
class InputModuleJax:
    def __init__(self, vocab_vectors, rep_dim, dropout, key):
        self.rep_dim = rep_dim
        self.dropout = dropout  # TODO(synk): torch Dropout is identity in eval(); training dropout not modeled.
        self.embedding = jnp.asarray(vocab_vectors, jnp.float32)   # (V, E), row 0 = <pad>
        E = self.embedding.shape[1]
        H = rep_dim
        Hp = ((H + 127) // 128) * 128          # lane-dense padded hidden size
        self.Hp = Hp

        bound = 1.0 / np.sqrt(H)
        keys = jax.random.split(key, 12)

        def u(k_, shape):
            return np.array(jax.random.uniform(k_, shape, jnp.float32, -bound, bound))

        # raw PyTorch-layout params: W_ih (3H, E), W_hh (3H, H), biases (3H,)
        in_w_ih_f = u(keys[0], (3 * H, E)); in_w_hh_f = u(keys[1], (3 * H, H))
        in_b_ih_f = u(keys[2], (3 * H,));   in_b_hh_f = u(keys[3], (3 * H,))
        in_w_ih_b = u(keys[4], (3 * H, E)); in_w_hh_b = u(keys[5], (3 * H, H))
        in_b_ih_b = u(keys[6], (3 * H,));   in_b_hh_b = u(keys[7], (3 * H,))
        q_w_ih = u(keys[8], (3 * H, E));    q_w_hh = u(keys[9], (3 * H, H))
        q_b_ih = u(keys[10], (3 * H,));     q_b_hh = u(keys[11], (3 * H,))

        def pad_pack(w_ih, w_hh, b_ih, b_hh):
            # Pad each gate chunk H -> Hp with zeros (numerically inert: padded hidden
            # columns provably stay exactly 0) and pre-transpose ONCE.
            G = 3 * Hp
            wih_p = np.zeros((G, E), np.float32)
            whh_p = np.zeros((G, Hp), np.float32)
            bih_p = np.zeros((G,), np.float32)
            bhh_p = np.zeros((G,), np.float32)
            for g in range(3):
                wih_p[g * Hp:g * Hp + H] = w_ih[g * H:(g + 1) * H]
                whh_p[g * Hp:g * Hp + H, :H] = w_hh[g * H:(g + 1) * H]
                bih_p[g * Hp:g * Hp + H] = b_ih[g * H:(g + 1) * H]
                bhh_p[g * Hp:g * Hp + H] = b_hh[g * H:(g + 1) * H]
            return wih_p.T, whh_p.T, bih_p.reshape(1, G), bhh_p.reshape(1, G)

        fwd = pad_pack(in_w_ih_f, in_w_hh_f, in_b_ih_f, in_b_hh_f)
        bwd = pad_pack(in_w_ih_b, in_w_hh_b, in_b_ih_b, in_b_hh_b)
        qst = pad_pack(q_w_ih, q_w_hh, q_b_ih, q_b_hh)

        # hoisted input-projection weights: both input-GRU directions in ONE GEMM
        self.in_wih_cat_T = jnp.asarray(
            np.concatenate([fwd[0], bwd[0]], axis=1), jnp.bfloat16)       # (E, 6Hp)
        self.in_bih_cat = jnp.asarray(
            np.concatenate([fwd[2], bwd[2]], axis=1), jnp.float32)        # (1, 6Hp)
        self.q_wih_T = jnp.asarray(qst[0], jnp.bfloat16)                  # (E, 3Hp)
        self.q_bih = jnp.asarray(qst[2], jnp.float32)                     # (1, 3Hp)

        # block-diagonal recurrent weight: h = [h_fwd | h_bwd | h_q] (3Hp rows) maps to
        # [fwd gates | bwd gates | q gates] (9Hp cols) -> one MXU dot per time step.
        wblk = np.zeros((3 * Hp, 9 * Hp), np.float32)
        wblk[0 * Hp:1 * Hp, 0 * Hp:3 * Hp] = fwd[1]
        wblk[1 * Hp:2 * Hp, 3 * Hp:6 * Hp] = bwd[1]
        wblk[2 * Hp:3 * Hp, 6 * Hp:9 * Hp] = qst[1]
        self.whh_blk = jnp.asarray(wblk, jnp.bfloat16)                    # (3Hp, 9Hp)
        self.bhh_cat = jnp.asarray(
            np.concatenate([fwd[3], bwd[3], qst[3]], axis=1), jnp.float32)  # (1, 9Hp)

    # -- per-sentence averaging + compaction matrices, built on DEVICE --------------
    def _build_segments(self, sentence_lengths, doc_len):
        sl_np = np.asarray(sentence_lengths, np.int64)
        B, S = sl_np.shape
        num_facts = [int(n) for n in (sl_np > 0).sum(axis=1)]
        max_facts = max(num_facts)

        sl = jnp.asarray(sl_np, jnp.int32)                                  # (B, S)
        starts = jnp.concatenate(
            [jnp.zeros((B, 1), jnp.int32), jnp.cumsum(sl, axis=1)[:, :-1]], axis=1)
        pos = jax.lax.broadcasted_iota(jnp.int32, (B, S, doc_len), 2)
        in_seg = (pos >= starts[:, :, None]) & (pos < (starts + sl)[:, :, None])
        valid = sl > 0
        rows = (in_seg.astype(jnp.float32)
                / jnp.maximum(sl, 1)[:, :, None].astype(jnp.float32)
                * valid[:, :, None].astype(jnp.float32))                    # (B, S, L)
        # compact non-empty sentences onto fact slots; empty sentences match no slot
        f_idx = jnp.where(valid, jnp.cumsum(valid.astype(jnp.int32), axis=1) - 1,
                          max_facts)
        fpos = jax.lax.broadcasted_iota(jnp.int32, (B, max_facts, S), 1)
        onehot_T = (f_idx[:, None, :] == fpos).astype(jnp.float32)          # (B, maxF, S)
        return rows, onehot_T, num_facts

    def forward(self, queries, query_lengths, docs, sentence_lengths):
        queries = jnp.asarray(queries)
        docs = jnp.asarray(docs)
        B, Lq = queries.shape
        E = self.embedding.shape[1]
        Hp = self.Hp
        H = self.rep_dim

        emb_docs = self.embedding[docs]                                  # (B, Ld, E) f32
        # gather queries already time-major -> no transpose pass before the GEMM
        emb_queries_t = self.embedding[queries.T].astype(jnp.bfloat16)   # (Lq, B, E) bf16

        # ---- facts: per-sentence mean pooling (grid=(B,) Pallas matmuls) ------------
        rows, onehot_T, num_facts = self._build_segments(sentence_lengths,
                                                         emb_docs.shape[1])
        facts = segment_mean_pallas(onehot_T, rows, emb_docs)            # (B, F, E) bf16
        F = facts.shape[1]
        facts_t = jnp.transpose(facts, (1, 0, 2))                        # (F, B, E)
        # TODO(synk): training-mode dropout on facts is not modeled (eval() identity).

        # ---- hoisted input projections (bf16 GEMMs, time-major gi layouts) ----------
        gi_fb = linear_pallas(facts_t.reshape(F * B, E),
                              self.in_wih_cat_T, self.in_bih_cat).reshape(F, B, 6 * Hp)
        gi_q = linear_pallas(emb_queries_t.reshape(Lq * B, E),
                             self.q_wih_T, self.q_bih).reshape(Lq, B, 3 * Hp)

        # ---- fused recurrence: input fwd + input bwd + question in ONE scan ---------
        nf = jnp.asarray(np.asarray(num_facts), jnp.int32).reshape(B, 1)
        ql = jnp.asarray(query_lengths, jnp.int32).reshape(B, 1)
        out_fb, hq = fused_gru_pallas(gi_fb, gi_q, self.whh_blk, self.bhh_cat, nf, ql)

        f_rep = jnp.transpose(out_fb, (1, 0, 2))[:, :, :H]               # (B, F, rep)
        q_rep = hq[:, None, :H]                                          # (B, 1, rep)
        return q_rep, f_rep, num_facts


# ---------------------------------------------------------------------------
# Demo
# ---------------------------------------------------------------------------
if __name__ == "__main__":
    key = jax.random.PRNGKey(0)
    k_emb, k_q, k_d, k_params = jax.random.split(key, 4)

    vocab_size, emb_dim, rep_dim, dropout = 50, 32, 32, 0.1
    B, max_query_len, max_doc_len, max_num_sent = 2, 6, 16, 4

    # GloVe-like embedding table; row 0 is the <pad> vector (zeros).
    vectors = jax.random.normal(k_emb, (vocab_size, emb_dim), jnp.float32)
    vectors = vectors.at[0].set(0.0)

    # np.array(...) copies the device buffer into a WRITABLE host array.
    queries = np.array(jax.random.randint(k_q, (B, max_query_len), 1, vocab_size))
    docs = np.array(jax.random.randint(k_d, (B, max_doc_len), 1, vocab_size))

    query_lengths = np.array([6, 4], np.int32)
    for b in range(B):
        queries[b, query_lengths[b]:] = 0

    sentence_lengths = np.array([[5, 4, 4, 3],
                                 [6, 5, 0, 0]], np.int32)
    for b in range(B):
        docs[b, int(sentence_lengths[b].sum()):] = 0

    module = InputModuleJax(vectors, rep_dim, dropout, k_params)
    q_rep, f_rep, num_facts = module.forward(queries, query_lengths, docs,
                                             sentence_lengths)

    jax.block_until_ready((q_rep, f_rep))
    assert q_rep.shape == (B, 1, rep_dim)
    assert f_rep.shape == (B, max(num_facts), rep_dim)
    assert num_facts == [4, 2]
    print("KERNEL_OK")
</pallas_src>

<mosaic_0001>
module attributes {stable_mosaic.version = 11 : i64} {
  func.func @_segmean_kernel(%arg0: i32, %arg1: memref<1x4x4xf32, #tpu.memory_space<vmem>>, %arg2: memref<1x4x16xf32, #tpu.memory_space<vmem>>, %arg3: memref<1x16x32xf32, #tpu.memory_space<vmem>>, %arg4: memref<1x4x32xbf16, #tpu.memory_space<vmem>>) attributes {dimension_semantics = [#tpu.dimension_semantics<parallel>], iteration_bounds = array<i64: 2>, scalar_prefetch = 0 : i64, scratch_operands = 0 : i64, tpu.core_type = #tpu.core_type<tc>, window_params = [{transform_indices = @transform_0, window_bounds = array<i64: 1, 4, 4>}, {transform_indices = @transform_1, window_bounds = array<i64: 1, 4, 16>}, {transform_indices = @transform_2, window_bounds = array<i64: 1, 16, 32>}, {transform_indices = @transform_3, window_bounds = array<i64: 1, 4, 32>}]} {
    %c0 = arith.constant 0 : index
    %c0_0 = arith.constant 0 : index
    %c0_1 = arith.constant 0 : index
    %0 = vector.load %arg2[%c0, %c0_0, %c0_1] : memref<1x4x16xf32, #tpu.memory_space<vmem>>, vector<1x4x16xf32>
    %1 = vector.shape_cast %0 : vector<1x4x16xf32> to vector<4x16xf32>
    %c0_2 = arith.constant 0 : index
    %c0_3 = arith.constant 0 : index
    %c0_4 = arith.constant 0 : index
    %2 = vector.load %arg3[%c0_2, %c0_3, %c0_4] : memref<1x16x32xf32, #tpu.memory_space<vmem>>, vector<1x16x32xf32>
    %3 = vector.shape_cast %2 : vector<1x16x32xf32> to vector<16x32xf32>
    %cst = arith.constant dense<0.000000e+00> : vector<4x32xf32>
    %4 = tpu.matmul %1, %3, %cst {dimension_numbers = #tpu.dot_dimension_numbers<[1], [0], [0], [1], [0, 0, 1, 1], [], []>} : vector<4x16xf32>, vector<16x32xf32>, vector<4x32xf32> -> vector<4x32xf32>
    %c0_5 = arith.constant 0 : index
    %c0_6 = arith.constant 0 : index
    %c0_7 = arith.constant 0 : index
    %5 = vector.load %arg1[%c0_5, %c0_6, %c0_7] : memref<1x4x4xf32, #tpu.memory_space<vmem>>, vector<1x4x4xf32>
    %6 = vector.shape_cast %5 : vector<1x4x4xf32> to vector<4x4xf32>
    %cst_8 = arith.constant dense<0.000000e+00> : vector<4x32xf32>
    %7 = tpu.matmul %6, %4, %cst_8 {dimension_numbers = #tpu.dot_dimension_numbers<[1], [0], [0], [1], [0, 0, 1, 1], [], []>} : vector<4x4xf32>, vector<4x32xf32>, vector<4x32xf32> -> vector<4x32xf32>
    %8 = arith.truncf %7 : vector<4x32xf32> to vector<4x32xbf16>
    %c0_9 = arith.constant 0 : index
    %c0_10 = arith.constant 0 : index
    %c0_11 = arith.constant 0 : index
    %9 = vector.load %arg4[%c0_9, %c0_10, %c0_11] : memref<1x4x32xbf16, #tpu.memory_space<vmem>>, vector<1x4x32xbf16>
    %10 = vector.shape_cast %9 : vector<1x4x32xbf16> to vector<4x32xbf16>
    %11 = vector.shape_cast %8 : vector<4x32xbf16> to vector<1x4x32xbf16>
    tpu.vector_store %arg4[%c0_9, %c0_10, %c0_11], %11 {strides = array<i32>} : memref<1x4x32xbf16, #tpu.memory_space<vmem>>, vector<1x4x32xbf16>,
    return
  }
  func.func @transform_0(%arg0: i32) -> (i32, i32, i32) {
    %c0_i32 = arith.constant 0 : i32
    %c0_i32_0 = arith.constant 0 : i32
    %c0_i32_1 = arith.constant 0 : i32
    return %arg0, %c0_i32, %c0_i32_0 : i32, i32, i32
  }
  func.func @transform_1(%arg0: i32) -> (i32, i32, i32) {
    %c0_i32 = arith.constant 0 : i32
    %c0_i32_0 = arith.constant 0 : i32
    %c0_i32_1 = arith.constant 0 : i32
    return %arg0, %c0_i32, %c0_i32_0 : i32, i32, i32
  }
  func.func @transform_2(%arg0: i32) -> (i32, i32, i32) {
    %c0_i32 = arith.constant 0 : i32
    %c0_i32_0 = arith.constant 0 : i32
    %c0_i32_1 = arith.constant 0 : i32
    return %arg0, %c0_i32, %c0_i32_0 : i32, i32, i32
  }
  func.func @transform_3(%arg0: i32) -> (i32, i32, i32) {
    %c0_i32 = arith.constant 0 : i32
    %c0_i32_0 = arith.constant 0 : i32
    %c0_i32_1 = arith.constant 0 : i32
    return %arg0, %c0_i32, %c0_i32_0 : i32, i32, i32
  }
}

</mosaic_0001>

<bundles_post_ra>
// kernel: tpu_custom_call.1
= control target key start
LH: loop header
LB: loop body
LE: loop exit
PB: predicated region body
PF: predicated region fallthrough
CT: control target
= control target key end

     0   :  { %s1086_s0 = inlined_call_operand.hbm [shape: f32[2,4,4], index: 0, kind: input, shape index: {}]   ;;  %s1087_s1 = inlined_call_operand.hbm [shape: f32[2,4,16], index: 1, kind: input, shape index: {}]   ;;  %s1088_s2 = inlined_call_operand.hbm [shape: f32[2,16,32], index: 2, kind: input, shape index: {}]   ;;  %s1089_s3 = inlined_call_operand.hbm [shape: bf16[2,4,32], index: 3, kind: output, shape index: {}]  }
   0x1   :  { %1092 = sst [smem:[#allocation12_spill]] %s1087_s1 }
   0x2   :  { %8 = vsyncpa [#allocation3], 0 }
   0x3   :  { %10 = vsyncpa [#allocation3 + $0x1], 0 }
   0x4   :  { %11 = vsyncpa [#allocation6], 0 }
   0x5   :  { %13 = vsyncpa [#allocation6 + $0x1], 0 }
   0x6   :  { %14 = vsyncpa [#allocation4], 0 }
   0x7   :  { %16 = vsyncpa [#allocation4 + $0x1], 0  ;;  %s841_s12 = smov 0   ;;  %s843_s13 = smov 0  }
   0x8   :  { %s845_s14 = smov 0   ;;  %s847_s15 = smov 0  }
   0x9 LB: > { %s862_s16 = sadd.s32 4294967295, %s810_s15   ;;  %s546_s17 = sadd.s32 4294967294, %s810_s15   ;;  %s810_s15 = sphi %s847_s15, %s1108_s15   ;;  %s806_s14 = sphi %s845_s14, %s1107_s14   ;;  %s802_s13 = sphi %s843_s13, %s1106_s13   ;;  %s798_s12 = sphi %s841_s12, %s1105_s12  }
   0xa   : > { %s866_s18 = sadd.s32 1, %s810_s15   ;;  %s29_s19 = sadd.s32 1, %s806_s14 }
   0xb   : > { %s26_s20 = ssub.s32 %s810_s15, %s866_s18  ;;  %p36_p0 = scmp.ne.s32.totalorder %s806_s14, %s802_s13 }
   0xc   : > { %p27_p1 = scmp.eq.s32.totalorder %s26_s20, 0  ;;  %p37_p2 = scmp.eq.s32.totalorder %s810_s15, 0 }
   0xd   : > { %p42_p3 = scmp.ne.s32.totalorder %s802_s13, %s798_s12  ;;  %p43_p4 = scmp.eq.s32.totalorder %s862_s16, 0 }
   0xe   : > { %s878_s21 = scalar_select %p27_p1, %s806_s14, %s29_s19  }
   0xf   : > { %p38_p5 = por %p37_p2, %p36_p0  ;;  %p880_p6 = por %p43_p4, %p42_p3 }
  0x10   : > { %p118_p7 = scmp.eq.s32.totalorder %s862_s16, 1  ;;  %p124_p8 = scmp.eq.s32.totalorder %s546_s17, 1 }
  0x11   : > { %s1093_s22 = scalar_select %p880_p6, 1, 0 }
  0x12   : > { %p611_p10 = scmp.lt.s32.totalorder %s810_s15, 2  ;;  %p887_p11 = por %p118_p7, %p36_p0 }
  0x13   : > { %p891_p12 = por %p124_p8, %p42_p3  ;;  %s896_s25 = sand.u32 1, %s806_s14  }
  0x14   : > { %s1094_s23 = scalar_select %p887_p11, 1, 0 }
  0x15   : > { %s1095_s24 = scalar_select %p891_p12, 1, 0 }
  0x16   : > { %s550_s26 = sshll.u32 %s810_s15, 6  ;;  %s549_s27 = sshll.u32 %s896_s25, 2 }
  0x17   : > { %p900_p13 = pnand %p611_p10, %p38_p5  ;;  %s162_s29 = sand.u32 1, %s810_s15  }
  0x18   : > { %s1097_s1 = sld [smem:[#allocation12_spill]]  ;;  %s166_s6 = scalar_lea.vmem [#allocation5], %s549_s27 }
  0x19   : > { %s173_s7 = sshll.u32 %s166_s6, 4  ;;  %s553_s8 = sshll.u32 %s896_s25, 4  ;;  %s914_s7 = int_to_ptr.vmem [resolvable:$true] %s173_s7 }
  0x1a   : > { %s917_s9 = scalar_lea.sflag [#allocation6], %s162_s29  ;;  %p923_p1 = pneg %p900_p13 }
  0x1e   : > { %s910_s5 = scalar_lea.hbm %s1097_s1, %s550_s26  ;;  %s655_s20 = scalar_lea.hbm %s1097_s1, 128 }
  0x1f   : > { %s650_s10 = scalar_lea.hbm %s910_s5, 64  ;;  %p656_p4 = scmp.lt.u32.totalorder %s910_s5, %s1097_s1 }
  0x20   : > { %p651_p0 = scmp.ne.s32.totalorder %s910_s5, %s650_s10  ;;  %p657_p5 = scmp.lt.u32.totalorder %s655_s20, %s650_s10 }
  0x21   : > { %p659_p8 = scmp.lt.u32.totalorder %s650_s10, %s910_s5 }
  0x22   : > { %p653_p2 = pnand %p923_p1, %p651_p0  ;;  %p658_p7 = por %p657_p5, %p656_p4 }
  0x24   : > { %p654_p3 = pneg %p653_p2  ;;  %p660_p10 = por %p659_p8, %p658_p7 }
  0x26   : > { %p661_p9 = pnand %p660_p10, %p654_p3 }
  0x28   : > { %664 = shalt.err (!%p661_p9)
}
  0x29   : > { %s665_s29 = scalar_lea.vmem %s914_s7, 64  ;;  %s812_s6 = smov [#allocation5]  }
  0x2a   : > { %p666_p0 = scmp.ne.s32.totalorder %s914_s7, %s665_s29  ;;  %s670_s17 = sshll.u32 %s812_s6, 4  ;;  %s671_s17 = int_to_ptr.vmem [resolvable:$false] %s670_s17 }
  0x2b   : > { %s672_s19 = scalar_lea.vmem %s671_s17, 128  ;;  %p673_p11 = scmp.lt.s32.totalorder %s914_s7, %s671_s17 }
  0x2c   : > { %p668_p2 = pnand %p666_p0, %p923_p1  ;;  %p674_p6 = scmp.lt.s32.totalorder %s672_s19, %s665_s29 }
  0x2e   : > { %p669_p12 = pneg %p668_p2  ;;  %p675_p4 = por %p674_p6, %p673_p11 }
  0x30   : > { %p676_p5 = pnand %p675_p4, %p669_p12 }
  0x32   : > { %679 = shalt.err (!%p676_p5)
}
  0x33   : > { %603 = dma.hbm_to_vmem [thread:$0]  (!%p900_p13), %s910_s5, 64, %s914_s7, %s917_s9  }
  0x34   : > { %p556_p9 = scmp.ge.s32.totalorder %s810_s15, 1  ;;  %s184_s10 = scalar_lea.vmem [#allocation7], %s553_s8 }
  0x35   : > { %s191_s20 = sshll.u32 %s184_s10, 4  ;;  %p199_p6 = scmp.lt.s32.totalorder %s810_s15, 3  ;;  %s951_s20 = int_to_ptr.vmem [resolvable:$true] %s191_s20 }
  0x36   : > { %s962_s6 = scalar_lea.hbm %s1086_s0, %s550_s26  ;;  %s148_s5 = scalar_lea.vmem [#allocation2], %s549_s27 }
  0x37   : > { %p953_p11 = pnand %p556_p9, %p199_p6  ;;  %s155_s7 = sshll.u32 %s148_s5, 4  ;;  %s966_s7 = int_to_ptr.vmem [resolvable:$true] %s155_s7 }
  0x38   : > { %s568_s8 = sshll.u32 %s810_s15, 8  ;;  %s145_s17 = scalar_lea.sflag [#allocation3], %s896_s25 }
  0x39   : > { %s1099_s30 = scalar_select %p953_p11, 1, 0 }
  0x3a   : > { %s680_s19 = scalar_lea.hbm %s962_s6, 64  ;;  %s685_s26 = scalar_lea.hbm %s1086_s0, 128 }
  0x3b   : > { %p681_p12 = scmp.ne.s32.totalorder %s962_s6, %s680_s19  ;;  %p686_p8 = scmp.lt.u32.totalorder %s962_s6, %s1086_s0 }
  0x3c   : > { %p687_p10 = scmp.lt.u32.totalorder %s685_s26, %s680_s19  ;;  %p689_p2 = scmp.lt.u32.totalorder %s680_s19, %s962_s6 }
  0x3d   : > { %p683_p3 = pnand %p681_p12, %p923_p1 }
  0x3e   : > { %p688_p0 = por %p687_p10, %p686_p8 }
  0x3f   : > { %p684_p7 = pneg %p683_p3 }
  0x40   : > { %p690_p4 = por %p689_p2, %p688_p0 }
  0x42   : > { %p691_p5 = pnand %p690_p4, %p684_p7 }
  0x44   : > { %694 = shalt.err (!%p691_p5)
}
  0x45   : > { %s695_s25 = scalar_lea.vmem %s966_s7, 64  ;;  %s813_s27 = smov [#allocation2]  }
  0x46   : > { %p696_p9 = scmp.ne.s32.totalorder %s966_s7, %s695_s25  ;;  %s700_s5 = sshll.u32 %s813_s27, 4  ;;  %s701_s5 = int_to_ptr.vmem [resolvable:$false] %s700_s5 }
  0x47   : > { %s702_s1 = scalar_lea.vmem %s701_s5, 128  ;;  %p703_p3 = scmp.lt.s32.totalorder %s966_s7, %s701_s5 }
  0x48   : > { %p698_p6 = pnand %p696_p9, %p923_p1  ;;  %p704_p11 = scmp.lt.s32.totalorder %s702_s1, %s695_s25 }
  0x4a   : > { %p699_p12 = pneg %p698_p6  ;;  %p705_p8 = por %p704_p11, %p703_p3 }
  0x4c   : > { %p706_p10 = pnand %p705_p8, %p699_p12 }
  0x4e   : > { %709 = shalt.err (!%p706_p10)
}
  0x4f   : > { %600 = dma.hbm_to_vmem [thread:$0]  (!%p900_p13), %s962_s6, 64, %s966_s7, %s145_s17  }
  0x50   : > { %s996_s4 = scalar_lea.hbm %s1088_s2, %s568_s8  ;;  %s715_s27 = scalar_lea.hbm %s1088_s2, 512 }
  0x51   : > { %s710_s26 = scalar_lea.hbm %s996_s4, 256  ;;  %p716_p2 = scmp.lt.u32.totalorder %s996_s4, %s1088_s2 }
  0x52   : > { %p711_p11 = scmp.ne.s32.totalorder %s996_s4, %s710_s26  ;;  %p717_p4 = scmp.lt.u32.totalorder %s715_s27, %s710_s26 }
  0x53   : > { %p719_p9 = scmp.lt.u32.totalorder %s710_s26, %s996_s4 }
  0x54   : > { %p713_p7 = pnand %p711_p11, %p923_p1  ;;  %p718_p5 = por %p717_p4, %p716_p2 }
  0x56   : > { %p714_p0 = pneg %p713_p7  ;;  %p720_p6 = por %p719_p9, %p718_p5 }
  0x58   : > { %p721_p12 = pnand %p720_p6, %p714_p0 }
  0x5a   : > { %724 = shalt.err (!%p721_p12)
}
  0x5b   : > { %s725_s8 = scalar_lea.vmem %s951_s20, 256  ;;  %s814_s17 = smov [#allocation7]  }
  0x5c   : > { %p726_p3 = scmp.ne.s32.totalorder %s951_s20, %s725_s8  ;;  %s730_s5 = sshll.u32 %s814_s17, 4  ;;  %s731_s5 = int_to_ptr.vmem [resolvable:$false] %s730_s5 }
  0x5d   : > { %s732_s1 = scalar_lea.vmem %s731_s5, 512  ;;  %p733_p11 = scmp.lt.s32.totalorder %s951_s20, %s731_s5 }
  0x5e   : > { %p728_p8 = pnand %p726_p3, %p923_p1  ;;  %p734_p7 = scmp.lt.s32.totalorder %s732_s1, %s725_s8 }
  0x60   : > { %p729_p10 = pneg %p728_p8  ;;  %p735_p2 = por %p734_p7, %p733_p11 }
  0x62   : > { %p736_p4 = pnand %p735_p2, %p729_p10 }
  0x64   : > { %739 = shalt.err (!%p736_p4)
}
  0x65   : > { %s815_s19 = smov 128   ;;  %s816_s10 = smov 8  }
  0x66   : > { %606 = dma.hbm_to_vmem [thread:$0]  (!%p900_p13), %s996_s4, 256, %s951_s20, %s917_s9, %s815_s19, %s815_s19, %s816_s10  }
  0x67   : > { %p1100_p1 = scmp.ne.s32.totalorder %s1099_s30, 0 }
  0x68   : > { %s1023_s11 = sand.u32 (!%p1100_p1), 1, %s802_s13   ;;  %p1101_p0 = scmp.ne.s32.totalorder (!%p1100_p1), %s1093_s22, 0 }
  0x69   : > { %203 = sbr.rel (%p1100_p1) target bundleno = 565 (0x235), region = 32  ;;  %s557_s26 = sshll.u32 (!%p1100_p1), %s1023_s11, 2 }
  0x6a   : > { %s206_s29 = scalar_lea.sflag (!%p1100_p1), [#allocation3], %s1023_s11  ;;  %s209_s25 = scalar_lea.vmem (!%p1100_p1), [#allocation2], %s557_s26 }
  0x70   : > { %785 = dma.done.wait (%p1101_p0), %s206_s29, 64  }
  0x71   : > { %787 = vsyncadd (%p1101_p0), %s206_s29, 4294967232  ;;  %s214_s28 = sand.u32 1, %s862_s16   ;;  %s218_s20 = scalar_lea.vmem [#allocation5], %s557_s26 }
  0x72   : > { %s215_s9 = scalar_lea.sflag [#allocation6], %s214_s28 }
  0x73   : > { %789 = dma.done.wait (%p1101_p0), %s215_s9, 320  }
  0x74   : > { %791 = vsyncadd (%p1101_p0), %s215_s9, 4294966976  ;;  %v817_v0 = vmov 0.0|0.0   ;;  %s559_s30 = sshll.u32 %s1023_s11, 4  ;;  %vm818_vm0 = vmmov 0   ;;  %v819_v1 = vmov 0.0   ;;  %vm263_vm1 = vcmask 130048  }
  0x75   : > { %586 = vmatprep.subr.bf16.mxu0 %v817_v0  ;;  %578 = vmatprep.mubr.msk.f32.mxu0 %vm818_vm0, %v819_v1  ;;  %s227_s4 = scalar_lea.vmem [#allocation7], %s559_s30  ;;  %v260_v5 = vld [vmem:[%s218_s20] sm:$0xf]  ;;  %vm342_vm2 = vcmask 1043456   ;;  %v337_v6 = vld [vmem:[%s209_s25] sm:$0xf] }
  0x76   : > { %581 = vmatprep.subr.mxu1 %v819_v1  ;;  %583 = vmatprep.mubr.msk.f32.mxu1 %vm818_vm0, %v819_v1  ;;  %v261_v2 = vld [vmem:[%s227_s4] sm:$0xff]  ;;  %v262_v3 = vld [vmem:[%s227_s4 + $0x8] sm:$0xff]  ;;  %vm338_vm3 = vcmask 31744   ;;  %s560_s22 = sshll.u32 %s1023_s11, 1  ;;  %s565_s27 = sshll.u32 %s862_s16, 5  ;;  %vm417_vm4 = vcmask 254976  }
  0x77   : > { %v587_v4 = vpack.c.bf16 %v262_v3, %v261_v2  ;;  %s259_s6 = scalar_lea.vmem [#allocation8], %s560_s22  ;;  %s1042_s5 = scalar_lea.hbm %s1089_s3, %s565_s27 }
  0x78   : > { %s433_s7 = sshll.u32 %s259_s6, 4  ;;  %s420_s1 = scalar_lea.sflag [#allocation4], %s1023_s11  ;;  %s1044_s7 = int_to_ptr.vmem [resolvable:$true] %s433_s7 }
  0x79   : > { %588 = vmatpush3.bf16.msra.mxu0 %v587_v4  ;;  %s740_s19 = scalar_lea.vmem %s1044_s7, 32  ;;  %p1102_p5 = scmp.ne.s32.totalorder %s1094_s23, 0 }
  0x7a   : > { %p741_p13 = scmp.ne.s32.totalorder %s1044_s7, %s740_s19  ;;  %s820_s16 = smov [#allocation8]  }
  0x7b   : > { %s744_s10 = sshll.u32 %s820_s16, 4  ;;  %s745_s10 = int_to_ptr.vmem [resolvable:$false] %s744_s10 }
  0x7c   : > { %579 = vmatmul.mubr.msk.f32.vlgmr.msra.gmra.mrb[0].mxu0 %vm263_vm1, %v260_v5  ;;  %p742_p9 = pnand %p741_p13, %p1102_p5  ;;  %s746_s26 = scalar_lea.vmem %s745_s10, 64 }
  0x7d   : > { %p747_p12 = scmp.lt.s32.totalorder %s1044_s7, %s745_s10  ;;  %p748_p3 = scmp.lt.s32.totalorder %s746_s26, %s740_s19 }
  0x7e   : > { %p743_p6 = pneg %p742_p9 }
  0x7f   : > { %p749_p8 = por %p748_p3, %p747_p12 }
  0x81   : > { %p750_p10 = pnand %p749_p8, %p743_p6 }
 0x14f   : > { %v333_v7 = vpop.f32.mrb[0].mxu0 }
 0x150   : > { %v580_v8 = vpop.f32.mrb[1].mxu0  ;;  %582 = vmatpush3.msk.msra.mxu1 %vm342_vm2, %v333_v7 }
 0x151   : > { %584 = vmatmul.mubr.msk.f32.vlgmr.msra.gmra.mrb[0].mxu1 %vm338_vm3, %v337_v6 }
 0x224   : > { %v412_v9 = vpop.f32.mrb[0].mxu1 }
 0x225   : > { %v416_v10 = vpack.c.bf16 %v412_v9, %v412_v9  ;;  %v585_v11 = vpop.f32.mrb[1].mxu1 }
 0x227   : > { %418 = vst.msk [vmem:[%s259_s6] sm:$0x3] %vm417_vm4, %v416_v10 }
 0x228   : > { %753 = shalt.err (!%p750_p10)
}
 0x229   : > { %s754_s11 = scalar_lea.hbm %s1042_s5, 32  ;;  %s758_s28 = scalar_lea.hbm %s1089_s3, 64 }
 0x22a   : > { %p755_p11 = scmp.ne.s32.totalorder %s1042_s5, %s754_s11  ;;  %p759_p4 = scmp.lt.u32.totalorder %s1042_s5, %s1089_s3 }
 0x22b   : > { %p760_p1 = scmp.lt.u32.totalorder %s758_s28, %s754_s11  ;;  %p762_p13 = scmp.lt.u32.totalorder %s754_s11, %s1042_s5 }
 0x22c   : > { %p756_p7 = pnand %p755_p11, %p1102_p5 }
 0x22d   : > { %p761_p0 = por %p760_p1, %p759_p4 }
 0x22e   : > { %p757_p2 = pneg %p756_p7 }
 0x22f   : > { %p763_p9 = por %p762_p13, %p761_p0 }
 0x231   : > { %p764_p6 = pnand %p763_p9, %p757_p2 }
 0x233   : > { %767 = shalt.err (!%p764_p6)
}
 0x234   : > { %595 = dma.vmem_to_hbm [thread:$0]  (%p1102_p5), %s1044_s7, 32, %s1042_s5, %s420_s1  }
 0x235 PF: > { %s445_s30 = sand.u32 1, %s798_s12   ;;  %p1103_p12 = scmp.ne.s32.totalorder %s1095_s24, 0 }
 0x236   : > { %p1104_p3 = scmp.ge.s32.totalorder %s810_s15, 2  ;;  %s446_s4 = scalar_lea.sflag [#allocation4], %s445_s30 }
 0x238   : > { %p608_p8 = pnand %p1104_p3, %p1103_p12 }
 0x23a   : > { %793 = dma.done.wait (!%p608_p8), %s446_s4, 32  }
 0x23b   : > { %795 = vsyncadd (!%p608_p8), %s446_s4, 4294967264  ;;  %p19_p10 = scmp.ge.s32.totalorder %s866_s18, 4   ;;  %s1105_s12 = smov %s802_s13 }
 0x23c   : > { %s1106_s13 = smov %s806_s14  ;;  %s1107_s14 = smov %s878_s21 }
 0x23d   : > { %s1108_s15 = smov %s866_s18  ;;  %21 = sbr.rel (!%p19_p10) target bundleno = 9 (0x9), region = 101 }
 0x244   :  { %451 = vsyncpa [#allocation3], 1 }
 0x245   :  { %453 = vsyncpa [#allocation3 + $0x1], 1 }
 0x246   :  { %454 = vsyncpa [#allocation6], 1 }
 0x247   :  { %456 = vsyncpa [#allocation6 + $0x1], 1 }
 0x248   :  { %457 = vsyncpa [#allocation4], 1 }
 0x249   :  { %459 = vsyncpa [#allocation4 + $0x1], 1 }

</bundles_post_ra>
